<compile_context>
chip_gen: v7x
topology: tpu7x:2x2x1
jax: 0.10.0
libtpu: 0.0.40
codegen_flags: <defaults>
</compile_context>

<pallas_src>
import jax
import jax.numpy as jnp
from jax import lax
from jax.experimental import pallas as pl
from jax.experimental.pallas import tpu as pltpu

LANE = 128
SUBLANE = 8


def _fused_kernel(ids_ref, ef_ref, bf_ref, out_ref):
    # ids_ref: (TB, L)  int32 token ids for this batch tile
    # ef_ref : (Vp, Cp) f32 pre-folded  E @ W1^T @ W2^T / L   (vocab/class padded)
    # bf_ref : (1,  Cp) f32 pre-folded  b1 @ W2^T + b2        (class padded)
    # out_ref: (TB, Cp) f32 logits slab (sliced back to (B, C) in the wrapper)
    ids = ids_ref[...]
    tb, seq_len = ids.shape
    vp = ef_ref.shape[0]

    # One-hot token counts summed over the sequence -> (TB, Vp).
    # Tree reduction keeps the dependency depth at log2(L) so the 4 VALU slots can
    # overlap the compares and the adds (instead of a serial accumulate chain).
    lane_ids = lax.broadcasted_iota(jnp.int32, (tb, vp), 1)
    partials = [
        (ids[:, l:l + 1] == lane_ids).astype(jnp.float32) for l in range(seq_len)
    ]
    while len(partials) > 1:
        nxt = [partials[i] + partials[i + 1] for i in range(0, len(partials) - 1, 2)]
        if len(partials) % 2:
            nxt.append(partials[-1])
        partials = nxt
    counts = partials[0]

    # Single MXU matmul: (TB, Vp) @ (Vp, Cp).  The 1/L pooling scale and BOTH Linear
    # layers are already folded into ef/bf in the wrapper -> no extra VPU scale here.
    logits = jnp.dot(counts, ef_ref[...], preferred_element_type=jnp.float32)
    out_ref[...] = (logits + bf_ref[...]).astype(out_ref.dtype)


def torch_model_forward(token_ids, embedding, w1, b1, w2, b2, *, batch_tile=512):
    """token_ids: (B, L) int32.  Returns logits (B, class_num) float32."""
    B, L = token_ids.shape
    V, H = embedding.shape
    C = w2.shape[0]

    # --- Wrapper-side folds (pool commutes with the linear ops; C << H) -----------
    #   logits = mean_L(one_hot(ids)) @ E @ W1^T @ W2^T + (b1 @ W2^T + b2)
    # Folding E into the classifier gives ONE kernel matmul instead of two and shrinks
    # the resident weights from (Vp,H)+(H,Cp) to a single (Vp,Cp); the 1/L pooling
    # scale is folded in as well so the kernel has no per-tile VPU rescale.
    wf = (w1.T @ w2.T).astype(jnp.float32)                      # (H, C)
    ef = (embedding.astype(jnp.float32) @ wf) * (1.0 / L)       # (V, C)
    bf = (b1 @ w2.T + b2).astype(jnp.float32)                   # (C,)
    # TODO(synk): for realistic vocab sizes (Vp >> a few K) keep ef resident in bf16
    # and/or switch the one-hot+matmul pooling to an SMEM-prefetched row gather; the
    # O(TB*Vp) one-hot trick is only the right choice at toy vocab sizes.

    # Lane/sublane padding: class dim -> multiple of 128 (lane-dense output store and
    # aligned matmul N); vocab dim -> multiple of 128 (unmasked compares, aligned K).
    Cp = max(LANE, pl.cdiv(C, LANE) * LANE)
    Vp = max(LANE, pl.cdiv(V, LANE) * LANE)
    ef_p = jnp.zeros((Vp, Cp), jnp.float32).at[:V, :C].set(ef)
    bf_p = jnp.zeros((1, Cp), jnp.float32).at[:, :C].set(bf)

    # --- Batch tiling --------------------------------------------------------------
    # Pad the batch to a multiple of 8 (sublane) so (TB,Cp) stores are unmasked even
    # for tiny/odd B, and for larger B use >=2 (even) grid steps so both v7x
    # TensorCores get work under dimension_semantics=("parallel",).
    num_tiles = pl.cdiv(B, batch_tile)
    if B > 2 * SUBLANE:
        num_tiles = max(num_tiles, 2)
    if num_tiles > 1 and num_tiles % 2:
        num_tiles += 1
    TB = max(SUBLANE, pl.cdiv(pl.cdiv(B, num_tiles), SUBLANE) * SUBLANE)
    B_pad = pl.cdiv(B, TB) * TB

    ids = token_ids.astype(jnp.int32)
    if B_pad != B:
        # Padded rows use token 0 (padding row) -> their logits are just the bias;
        # they are sliced off below.
        ids = jnp.concatenate([ids, jnp.zeros((B_pad - B, L), jnp.int32)], axis=0)

    grid_spec = pltpu.PrefetchScalarGridSpec(
        num_scalar_prefetch=0,
        grid=(B_pad // TB,),
        in_specs=[
            pl.BlockSpec((TB, L), lambda b: (b, 0)),             # token-id tile
            pl.BlockSpec((Vp, Cp), lambda b: (0, 0),             # folded weight: constant
                         pipeline_mode=pl.Buffered(1)),          # index -> single buffer
            pl.BlockSpec((1, Cp), lambda b: (0, 0),
                         pipeline_mode=pl.Buffered(1)),
        ],
        out_specs=pl.BlockSpec((TB, Cp), lambda b: (b, 0)),
    )

    out = pl.pallas_call(
        _fused_kernel,
        out_shape=jax.ShapeDtypeStruct((B_pad, Cp), jnp.float32),
        grid_spec=grid_spec,
        compiler_params=pltpu.CompilerParams(
            dimension_semantics=("parallel",),                   # batch tiles -> megacore
            vmem_limit_bytes=32 * 1024 * 1024,                   # explicit; fits v5e/v6e/v7x
        ),
    )(ids, ef_p, bf_p)

    return out[:B, :C]


def _reference_forward(token_ids, embedding, w1, b1, w2, b2):
    emb = jnp.take(embedding, token_ids, axis=0)          # (B, L, H) embedding lookup
    h = jnp.einsum("blh,oh->blo", emb, w1) + b1           # Linear(H, H)
    pooled = jnp.mean(h, axis=1)                          # AvgPool1d(max_len) + squeeze
    return pooled @ w2.T + b2                             # Linear(H, C)


if __name__ == "__main__":
    # Small config consistent with the torch module's __init__
    hidden_size = 32
    vocab_size = 30            # embedding rows = vocab_size + 1 (padding_idx=0)
    max_len = 8
    class_num = 4
    batch = 2

    key = jax.random.PRNGKey(0)
    k_emb, k_w1, k_b1, k_w2, k_b2, k_x = jax.random.split(key, 6)

    embedding = jax.random.normal(k_emb, (vocab_size + 1, hidden_size), jnp.float32) * 0.1
    embedding = embedding.at[0].set(0.0)               # padding_idx=0 row is zero
    w1 = jax.random.normal(k_w1, (hidden_size, hidden_size), jnp.float32) * 0.1
    b1 = jax.random.normal(k_b1, (hidden_size,), jnp.float32) * 0.1
    w2 = jax.random.normal(k_w2, (class_num, hidden_size), jnp.float32) * 0.1
    b2 = jax.random.normal(k_b2, (class_num,), jnp.float32) * 0.1

    token_ids = jax.random.randint(k_x, (batch, max_len), 0, vocab_size + 1, jnp.int32)

    logits = torch_model_forward(token_ids, embedding, w1, b1, w2, b2)
    logits = jax.block_until_ready(logits)

    ref = _reference_forward(token_ids, embedding, w1, b1, w2, b2)
    assert logits.shape == (batch, class_num)
    assert jnp.allclose(logits, ref, atol=1e-4, rtol=1e-4), (
        float(jnp.max(jnp.abs(logits - ref))))

    print("KERNEL_OK")
</pallas_src>

<mosaic_0001>
module attributes {stable_mosaic.version = 11 : i64} {
  func.func @_fused_kernel(%arg0: i32, %arg1: memref<8x8xi32, #tpu.memory_space<vmem>>, %arg2: memref<128x128xf32, #tpu.memory_space<vmem>>, %arg3: memref<1x128xf32, #tpu.memory_space<vmem>>, %arg4: memref<8x128xf32, #tpu.memory_space<vmem>>) attributes {dimension_semantics = [#tpu.dimension_semantics<parallel>], iteration_bounds = array<i64: 1>, scalar_prefetch = 0 : i64, scratch_operands = 0 : i64, tpu.core_type = #tpu.core_type<tc>, window_params = [{transform_indices = @transform_0, window_bounds = array<i64: 8, 8>}, {pipeline_mode = #tpu.pipeline_mode<synchronous>, transform_indices = @transform_1, window_bounds = array<i64: 128, 128>}, {pipeline_mode = #tpu.pipeline_mode<synchronous>, transform_indices = @transform_2, window_bounds = array<i64: 1, 128>}, {transform_indices = @transform_3, window_bounds = array<i64: 8, 128>}]} {
    %c0 = arith.constant 0 : index
    %c0_0 = arith.constant 0 : index
    %0 = vector.load %arg1[%c0, %c0_0] : memref<8x8xi32, #tpu.memory_space<vmem>>, vector<8x8xi32>
    %1 = tpu.iota {dimensions = array<i32: 1>} : vector<8x128xi32>
    %2 = vector.extract_strided_slice %0 {offsets = [0, 0], sizes = [8, 1], strides = [1, 1]} : vector<8x8xi32> to vector<8x1xi32>
    %3 = vector.broadcast %2 : vector<8x1xi32> to vector<8x128xi32>
    %4 = arith.cmpi eq, %3, %1 : vector<8x128xi32>
    %5 = arith.extui %4 : vector<8x128xi1> to vector<8x128xi32>
    %6 = arith.sitofp %5 : vector<8x128xi32> to vector<8x128xf32>
    %7 = vector.extract_strided_slice %0 {offsets = [0, 1], sizes = [8, 1], strides = [1, 1]} : vector<8x8xi32> to vector<8x1xi32>
    %8 = vector.broadcast %7 : vector<8x1xi32> to vector<8x128xi32>
    %9 = arith.cmpi eq, %8, %1 : vector<8x128xi32>
    %10 = arith.extui %9 : vector<8x128xi1> to vector<8x128xi32>
    %11 = arith.sitofp %10 : vector<8x128xi32> to vector<8x128xf32>
    %12 = vector.extract_strided_slice %0 {offsets = [0, 2], sizes = [8, 1], strides = [1, 1]} : vector<8x8xi32> to vector<8x1xi32>
    %13 = vector.broadcast %12 : vector<8x1xi32> to vector<8x128xi32>
    %14 = arith.cmpi eq, %13, %1 : vector<8x128xi32>
    %15 = arith.extui %14 : vector<8x128xi1> to vector<8x128xi32>
    %16 = arith.sitofp %15 : vector<8x128xi32> to vector<8x128xf32>
    %17 = vector.extract_strided_slice %0 {offsets = [0, 3], sizes = [8, 1], strides = [1, 1]} : vector<8x8xi32> to vector<8x1xi32>
    %18 = vector.broadcast %17 : vector<8x1xi32> to vector<8x128xi32>
    %19 = arith.cmpi eq, %18, %1 : vector<8x128xi32>
    %20 = arith.extui %19 : vector<8x128xi1> to vector<8x128xi32>
    %21 = arith.sitofp %20 : vector<8x128xi32> to vector<8x128xf32>
    %22 = vector.extract_strided_slice %0 {offsets = [0, 4], sizes = [8, 1], strides = [1, 1]} : vector<8x8xi32> to vector<8x1xi32>
    %23 = vector.broadcast %22 : vector<8x1xi32> to vector<8x128xi32>
    %24 = arith.cmpi eq, %23, %1 : vector<8x128xi32>
    %25 = arith.extui %24 : vector<8x128xi1> to vector<8x128xi32>
    %26 = arith.sitofp %25 : vector<8x128xi32> to vector<8x128xf32>
    %27 = vector.extract_strided_slice %0 {offsets = [0, 5], sizes = [8, 1], strides = [1, 1]} : vector<8x8xi32> to vector<8x1xi32>
    %28 = vector.broadcast %27 : vector<8x1xi32> to vector<8x128xi32>
    %29 = arith.cmpi eq, %28, %1 : vector<8x128xi32>
    %30 = arith.extui %29 : vector<8x128xi1> to vector<8x128xi32>
    %31 = arith.sitofp %30 : vector<8x128xi32> to vector<8x128xf32>
    %32 = vector.extract_strided_slice %0 {offsets = [0, 6], sizes = [8, 1], strides = [1, 1]} : vector<8x8xi32> to vector<8x1xi32>
    %33 = vector.broadcast %32 : vector<8x1xi32> to vector<8x128xi32>
    %34 = arith.cmpi eq, %33, %1 : vector<8x128xi32>
    %35 = arith.extui %34 : vector<8x128xi1> to vector<8x128xi32>
    %36 = arith.sitofp %35 : vector<8x128xi32> to vector<8x128xf32>
    %37 = vector.extract_strided_slice %0 {offsets = [0, 7], sizes = [8, 1], strides = [1, 1]} : vector<8x8xi32> to vector<8x1xi32>
    %38 = vector.broadcast %37 : vector<8x1xi32> to vector<8x128xi32>
    %39 = arith.cmpi eq, %38, %1 : vector<8x128xi32>
    %40 = arith.extui %39 : vector<8x128xi1> to vector<8x128xi32>
    %41 = arith.sitofp %40 : vector<8x128xi32> to vector<8x128xf32>
    %42 = arith.addf %6, %11 : vector<8x128xf32>
    %43 = arith.addf %16, %21 : vector<8x128xf32>
    %44 = arith.addf %26, %31 : vector<8x128xf32>
    %45 = arith.addf %36, %41 : vector<8x128xf32>
    %46 = arith.addf %42, %43 : vector<8x128xf32>
    %47 = arith.addf %44, %45 : vector<8x128xf32>
    %48 = arith.addf %46, %47 : vector<8x128xf32>
    %c0_1 = arith.constant 0 : index
    %c0_2 = arith.constant 0 : index
    %49 = vector.load %arg2[%c0_1, %c0_2] : memref<128x128xf32, #tpu.memory_space<vmem>>, vector<128x128xf32>
    %cst = arith.constant dense<0.000000e+00> : vector<8x128xf32>
    %50 = tpu.matmul %48, %49, %cst {dimension_numbers = #tpu.dot_dimension_numbers<[1], [0], [0], [1], [0, 0, 1, 1], [], []>} : vector<8x128xf32>, vector<128x128xf32>, vector<8x128xf32> -> vector<8x128xf32>
    %c0_3 = arith.constant 0 : index
    %c0_4 = arith.constant 0 : index
    %51 = vector.load %arg3[%c0_3, %c0_4] : memref<1x128xf32, #tpu.memory_space<vmem>>, vector<1x128xf32>
    %52 = vector.broadcast %51 : vector<1x128xf32> to vector<8x128xf32>
    %53 = arith.addf %50, %52 : vector<8x128xf32>
    %c0_5 = arith.constant 0 : index
    %c0_6 = arith.constant 0 : index
    %54 = vector.load %arg4[%c0_5, %c0_6] : memref<8x128xf32, #tpu.memory_space<vmem>>, vector<8x128xf32>
    tpu.vector_store %arg4[%c0_5, %c0_6], %53 {strides = array<i32>} : memref<8x128xf32, #tpu.memory_space<vmem>>, vector<8x128xf32>,
    return
  }
  func.func @transform_0(%arg0: i32) -> (i32, i32) {
    %c0_i32 = arith.constant 0 : i32
    %c0_i32_0 = arith.constant 0 : i32
    return %arg0, %c0_i32 : i32, i32
  }
  func.func @transform_1(%arg0: i32) -> (i32, i32) {
    %c0_i32 = arith.constant 0 : i32
    %c0_i32_0 = arith.constant 0 : i32
    %c0_i32_1 = arith.constant 0 : i32
    return %c0_i32, %c0_i32_0 : i32, i32
  }
  func.func @transform_2(%arg0: i32) -> (i32, i32) {
    %c0_i32 = arith.constant 0 : i32
    %c0_i32_0 = arith.constant 0 : i32
    %c0_i32_1 = arith.constant 0 : i32
    return %c0_i32, %c0_i32_0 : i32, i32
  }
  func.func @transform_3(%arg0: i32) -> (i32, i32) {
    %c0_i32 = arith.constant 0 : i32
    %c0_i32_0 = arith.constant 0 : i32
    return %arg0, %c0_i32 : i32, i32
  }
}

</mosaic_0001>

<bundles_post_ra>
// kernel: tpu_custom_call.1
= control target key start
LH: loop header
LB: loop body
LE: loop exit
PB: predicated region body
PF: predicated region fallthrough
CT: control target
= control target key end

     0   :  { %8 = vsyncpa [#allocation3], 0  ;;  %s481_s0 = inlined_call_operand.hbm [shape: s32[8,8], index: 0, kind: input, shape index: {}]   ;;  %s482_s1 = inlined_call_operand.hbm [shape: f32[128,128], index: 1, kind: input, shape index: {}]   ;;  %s483_s2 = inlined_call_operand.vmem [shape: f32[1,128], index: 2, kind: input, shape index: {}]   ;;  %s484_s3 = inlined_call_operand.hbm [shape: f32[8,128], index: 3, kind: output, shape index: {}]  }
   0x1   :  { %9 = vsyncpa [#allocation6], 0 }
   0x2   :  { %10 = vsyncpa [#allocation4], 0  ;;  %s391_s12 = smov [#allocation2]   ;;  %s392_s14 = smov [#allocation5]  }
   0x3   :  { %s17_s13 = sshll.u32 %s391_s12, 4  ;;  %s26_s15 = sshll.u32 %s392_s14, 4  ;;  %s18_s13 = int_to_ptr.vmem [resolvable:$true] %s17_s13  ;;  %s427_s15 = int_to_ptr.vmem [resolvable:$true] %s26_s15 }
   0x4   :  { %s319_s18 = scalar_lea.hbm %s481_s0, 128 }
   0x5   :  { %p320_p0 = scmp.ne.s32.totalorder %s481_s0, %s319_s18  ;;  %p323_p1 = scmp.lt.u32.totalorder %s319_s18, %s481_s0 }
   0x7   :  { %p325_p2 = pnand %p323_p1, %p320_p0 }
   0x9   :  { %328 = shalt.err (!%p325_p2)
}
   0xa   :  { %s329_s23 = scalar_lea.vmem %s18_s13, 128  ;;  %p334_p4 = scmp.lt.s32.totalorder %s18_s13, %s18_s13 }
   0xb   :  { %p330_p3 = scmp.ne.s32.totalorder %s18_s13, %s329_s23  ;;  %p335_p5 = scmp.lt.s32.totalorder %s329_s23, %s329_s23 }
   0xd   :  { %p336_p6 = por %p335_p5, %p334_p4 }
   0xf   :  { %p337_p7 = pnand %p336_p6, %p330_p3 }
  0x11   :  { %340 = shalt.err (!%p337_p7)
}
  0x12   :  { %20 = dma.hbm_to_vmem [thread:$0]  %s481_s0, 128, %s18_s13, [#allocation3]  }
  0x13   :  { %s341_s28 = scalar_lea.hbm %s482_s1, 2048 }
  0x14   :  { %p342_p8 = scmp.ne.s32.totalorder %s482_s1, %s341_s28  ;;  %p345_p9 = scmp.lt.u32.totalorder %s341_s28, %s482_s1 }
  0x16   :  { %p347_p10 = pnand %p345_p9, %p342_p8 }
  0x18   :  { %350 = shalt.err (!%p347_p10)
}
  0x19   :  { %s351_s6 = scalar_lea.vmem %s427_s15, 2048  ;;  %p356_p12 = scmp.lt.s32.totalorder %s427_s15, %s427_s15 }
  0x1a   :  { %p352_p11 = scmp.ne.s32.totalorder %s427_s15, %s351_s6  ;;  %p357_p13 = scmp.lt.s32.totalorder %s351_s6, %s351_s6 }
  0x1c   :  { %p358_p0 = por %p357_p13, %p356_p12 }
  0x1e   :  { %p359_p1 = pnand %p358_p0, %p352_p11 }
  0x20   :  { %362 = shalt.err (!%p359_p1)
}
  0x21   :  { %s393_s0 = smov 128   ;;  %s394_s7 = smov 8  }
  0x22   :  { %32 = dma.hbm_to_vmem [thread:$0]  %s482_s1, 2048, %s427_s15, [#allocation6], %s393_s0, %s393_s0, %s394_s7  }
  0x23   :  { %385 = dma.done.wait [#allocation3], 128  }
  0x24   :  { %386 = vsyncadd [#allocation3], 4294967168 }
  0x25   :  { %387 = dma.done.wait [#allocation6], 2048  }
  0x26   :  { %388 = vsyncadd [#allocation6], 4294965248  ;;  %v395_v0 = vmov 2   ;;  %v396_v1 = vmov 0   ;;  %v397_v2 = vmov 0.0|0.0   ;;  %v41_v3 = vld [vmem:[#allocation2] sm:$0xff]  ;;  %v42_v39 = vlaneseq }
  0x27   :  { %312 = vset.pattern.permute.xlu1 %v395_v0  ;;  %310 = vset.pattern.permute.xlu0 %v396_v1  ;;  %v99_v4 = vld [vmem:[#allocation5] sm:$0xff]  ;;  %v100_v5 = vld [vmem:[#allocation5 + $0x8] sm:$0xff]  ;;  %v101_v7 = vld [vmem:[#allocation5 + $0x10] sm:$0xff]  ;;  %v398_v10 = vmov 3   ;;  %v399_v11 = vmov 1   ;;  %v400_v17 = vmov 4  }
  0x28   :  { %270 = vmatprep.subr.bf16.mxu0 %v397_v2  ;;  %57 = vperm.xlu1 %312, %v41_v3   ;;  %v271_v6 = vpack.c.bf16 %v100_v5, %v99_v4  ;;  %v102_v8 = vld [vmem:[#allocation5 + $0x18] sm:$0xff]  ;;  %v103_v12 = vld [vmem:[#allocation5 + $0x20] sm:$0xff]  ;;  %v104_v13 = vld [vmem:[#allocation5 + $0x28] sm:$0xff]  ;;  %v401_v18 = vmov 5   ;;  %v402_v22 = vmov 6   ;;  %v403_v23 = vmov 7  }
  0x29   :  { %45 = vperm.xlu0 %310, %v41_v3   ;;  %v274_v9 = vpack.c.bf16 %v102_v8, %v101_v7  ;;  %v277_v14 = vpack.c.bf16 %v104_v13, %v103_v12  ;;  %v105_v15 = vld [vmem:[#allocation5 + $0x30] sm:$0xff]  ;;  %v106_v16 = vld [vmem:[#allocation5 + $0x38] sm:$0xff]  ;;  %v107_v20 = vld [vmem:[#allocation5 + $0x40] sm:$0xff]  ;;  %vm404_vm0 = vmmov 0   ;;  %v405_v33 = vmov 0.0   ;;  %s406_s11 = smov [#allocation7]  }
  0x2a   :  { %272 = vmatpush3.bf16.msra.mxu0 %v271_v6  ;;  %v280_v19 = vpack.c.bf16 %v106_v16, %v105_v15  ;;  %v108_v21 = vld [vmem:[#allocation5 + $0x48] sm:$0xff]  ;;  %v109_v25 = vld [vmem:[#allocation5 + $0x50] sm:$0xff]  ;;  %v110_v26 = vld [vmem:[#allocation5 + $0x58] sm:$0xff]  ;;  %267 = vmatprep.mubr.msk.f32.mxu0 %vm404_vm0, %v405_v33  ;;  %v43_v41 = vand.u32 127, %v42_v39  ;;  %s199_s12 = sshll.u32 %s406_s11, 4  ;;  %s200_s12 = int_to_ptr.vmem [resolvable:$true] %s199_s12 }
  0x2b   :  { %273 = vmatprep.subr.bf16.mxu0 %v397_v2  ;;  %v283_v24 = vpack.c.bf16 %v108_v21, %v107_v20  ;;  %v286_v27 = vpack.c.bf16 %v110_v26, %v109_v25  ;;  %v111_v28 = vld [vmem:[#allocation5 + $0x60] sm:$0xff]  ;;  %v112_v29 = vld [vmem:[#allocation5 + $0x68] sm:$0xff]  ;;  %v113_v31 = vld [vmem:[#allocation5 + $0x70] sm:$0xff]  ;;  %s363_s13 = scalar_lea.vmem %s200_s12, 128  ;;  %p368_p3 = scmp.lt.s32.totalorder %s200_s12, %s200_s12 }
  0x2c   :  { %313 = vset.pattern.permute.xlu1 %v398_v10  ;;  %v289_v30 = vpack.c.bf16 %v112_v29, %v111_v28  ;;  %v114_v32 = vld [vmem:[#allocation5 + $0x78] sm:$0xff]  ;;  %p364_p2 = scmp.ne.s32.totalorder %s200_s12, %s363_s13  ;;  %p369_p4 = scmp.lt.s32.totalorder %s363_s13, %s363_s13 }
  0x2d   :  { %311 = vset.pattern.permute.xlu0 %v399_v11  ;;  %63 = vperm.xlu1 %313, %v41_v3   ;;  %v292_v34 = vpack.c.bf16 %v114_v32, %v113_v31  ;;  %v217_v60 = vld [vmem:[%s483_s2] ss:$0 sm:$0xff] }
  0x2e   :  { %51 = vperm.xlu0 %311, %v41_v3   ;;  %275 = vmatpush3.bf16.msra.mxu0 %v274_v9  ;;  %p370_p5 = por %p369_p4, %p368_p3 }
  0x2f   :  { %276 = vmatprep.subr.bf16.mxu0 %v397_v2 }
  0x30   :  { %p371_p6 = pnand %p370_p5, %p364_p2 }
  0x31   :  { %314 = vset.pattern.permute.xlu1 %v400_v17 }
  0x32   :  { %315 = vset.pattern.permute.xlu0 %v401_v18  ;;  %69 = vperm.xlu1 %314, %v41_v3  }
  0x33   :  { %75 = vperm.xlu0 %315, %v41_v3   ;;  %278 = vmatpush3.bf16.msra.mxu0 %v277_v14 }
  0x34   :  { %279 = vmatprep.subr.bf16.mxu0 %v397_v2 }
  0x36   :  { %316 = vset.pattern.permute.xlu1 %v402_v22 }
  0x37   :  { %318 = vset.pattern.permute.xlu0 %v403_v23  ;;  %81 = vperm.xlu1 %316, %v41_v3  }
  0x38   :  { %281 = vmatpush3.bf16.msra.mxu0 %v280_v19 }
  0x39   :  { %282 = vmatprep.subr.bf16.mxu0 %v397_v2 }
  0x3b   :  { %317 = vset.pattern.permute.xlu1 %v403_v23 }
  0x3c   :  { %284 = vmatpush3.bf16.msra.mxu0 %v283_v24  ;;  %87 = vperm.xlu1 %317, %v41_v3  }
  0x3d   :  { %285 = vmatprep.subr.bf16.mxu0 %v397_v2 }
  0x40   :  { %287 = vmatpush3.bf16.msra.mxu0 %v286_v27 }
  0x41   :  { %288 = vmatprep.subr.bf16.mxu0 %v397_v2 }
  0x44   :  { %290 = vmatpush3.bf16.msra.mxu0 %v289_v30 }
  0x45   :  { %291 = vmatprep.subr.bf16.mxu0 %v397_v2 }
  0x48   :  { %293 = vmatpush3.bf16.msra.mxu0 %v292_v34 }
  0xa7   :  { %v58_v35 = vpop.permute.xlu1 %57 }
  0xa8   :  { %v46_v36 = vpop.permute.xlu0 %45  ;;  %vm59_vm4 = vcmp.eq.s32.totalorder %v58_v35, %v43_v41 }
  0xa9   :  { %vm47_vm1 = vcmp.eq.s32.totalorder %v46_v36, %v43_v41  ;;  %v211_v47 = vsel %vm59_vm4, 1.0, %v405_v33 }
  0xaa   :  { %v209_v44 = vsel %vm47_vm1, 1.0, %v405_v33 }
  0xac   :  { %v64_v37 = vpop.permute.xlu1 %63 }
  0xad   :  { %v52_v38 = vpop.permute.xlu0 %51  ;;  %vm65_vm2 = vcmp.eq.s32.totalorder %v64_v37, %v43_v41 }
  0xae   :  { %vm53_vm3 = vcmp.eq.s32.totalorder %v52_v38, %v43_v41  ;;  %v212_v45 = vsel %vm65_vm2, 1.0, %v405_v33 }
  0xaf   :  { %v210_v46 = vsel %vm53_vm3, 1.0, %v405_v33  ;;  %v93_v51 = vadd.f32 %v212_v45, %v211_v47 }
  0xb0   :  { %v92_v52 = vadd.f32 %v210_v46, %v209_v44 }
  0xb1   :  { %v70_v40 = vpop.permute.xlu1 %69 }
  0xb2   :  { %v76_v42 = vpop.permute.xlu0 %75  ;;  %vm71_vm5 = vcmp.eq.s32.totalorder %v70_v40, %v43_v41  ;;  %v96_v57 = vadd.f32 %v93_v51, %v92_v52 }
  0xb3   :  { %vm77_vm6 = vcmp.eq.s32.totalorder %v76_v42, %v43_v41  ;;  %v213_v48 = vsel %vm71_vm5, 1.0, %v405_v33 }
  0xb4   :  { %v214_v49 = vsel %vm77_vm6, 1.0, %v405_v33 }
  0xb5   :  { %v94_v55 = vadd.f32 %v214_v49, %v213_v48 }
  0xb6   :  { %v82_v43 = vpop.permute.xlu1 %81 }
  0xb7   :  { %vm83_vm7 = vcmp.eq.s32.totalorder %v82_v43, %v43_v41 }
  0xb8   :  { %v215_v53 = vsel %vm83_vm7, 1.0, %v405_v33 }
  0xbb   :  { %v88_v50 = vpop.permute.xlu1 %87 }
  0xbc   :  { %vm89_vm8 = vcmp.eq.s32.totalorder %v88_v50, %v43_v41 }
  0xbd   :  { %v216_v54 = vsel %vm89_vm8, 1.0, %v405_v33 }
  0xbe   :  { %v95_v56 = vadd.f32 %v216_v54, %v215_v53 }
  0xc0   :  { %v97_v58 = vadd.f32 %v95_v56, %v94_v55 }
  0xc2   :  { %v98_v59 = vadd.f32 %v97_v58, %v96_v57 }
  0xc4   :  { %268 = vmatmul.mubr.f32.vlgmr.msra.gmra.mrb[0].mxu0 %v98_v59 }
 0x197   :  { %v188_v61 = vpop.f32.mrb[0].mxu0 }
 0x198   :  { %v189_v62 = vadd.f32 %v217_v60, %v188_v61  ;;  %v269_v63 = vpop.f32.mrb[1].mxu0 }
 0x19a   :  { %192 = vst [vmem:[#allocation7] sm:$0xff] %v189_v62 }
 0x19b   :  { %374 = shalt.err (!%p371_p6)
}
 0x19c   :  { %s375_s16 = scalar_lea.hbm %s484_s3, 128 }
 0x19d   :  { %p376_p7 = scmp.ne.s32.totalorder %s484_s3, %s375_s16  ;;  %p379_p8 = scmp.lt.u32.totalorder %s375_s16, %s484_s3 }
 0x19f   :  { %p381_p9 = pnand %p379_p8, %p376_p7 }
 0x1a1   :  { %384 = shalt.err (!%p381_p9)
}
 0x1a2   :  { %202 = dma.vmem_to_hbm [thread:$0]  %s200_s12, 128, %s484_s3, [#allocation4]  }
 0x1a3   :  { %389 = dma.done.wait [#allocation4], 128  }
 0x1a4   :  { %390 = vsyncadd [#allocation4], 4294967168 }
 0x1a5   :  { %206 = vsyncpa [#allocation3], 1 }
 0x1a6   :  { %207 = vsyncpa [#allocation6], 1 }
 0x1a7   :  { %208 = vsyncpa [#allocation4], 1 }

</bundles_post_ra>
